<compile_context>
chip_gen: v5e
topology: v5e:2x2
jax: 0.10.0
libtpu: 0.0.40
codegen_flags: <defaults>
</compile_context>

<pallas_src>
import numpy as np
import jax
import jax.numpy as jnp
from jax.experimental import pallas as pl
from jax.experimental.pallas import tpu as pltpu


# ---------------------------------------------------------------------------
# Kernel bodies
# ---------------------------------------------------------------------------

def _make_pad_body_3d(h_in, w_in, pad_h, pad_w, fill_value, dtype):
    """Pads a (TL, h_in, w_in) input block into a (TL, h_out, w_out) output
    block.  Every output element is written exactly once: constant border
    strips + one offset interior copy (all slices are static)."""
    bh, eh = int(pad_h[0]), int(pad_h[1])
    bw, ew = int(pad_w[0]), int(pad_w[1])
    h_out = h_in + bh + eh
    w_out = w_in + bw + ew

    def body(x_ref, o_ref):
        tl = o_ref.shape[0]
        if bh:
            o_ref[:, 0:bh, :] = jnp.full((tl, bh, w_out), fill_value, dtype)
        if eh:
            o_ref[:, bh + h_in:h_out, :] = jnp.full((tl, eh, w_out), fill_value, dtype)
        if bw:
            o_ref[:, bh:bh + h_in, 0:bw] = jnp.full((tl, h_in, bw), fill_value, dtype)
        if ew:
            o_ref[:, bh:bh + h_in, bw + w_in:w_out] = jnp.full((tl, h_in, ew), fill_value, dtype)
        o_ref[:, bh:bh + h_in, bw:bw + w_in] = x_ref[...]

    return body


def _make_pad_body_2d(w_in, pad_w, fill_value, dtype):
    """Pads a (TL, w_in) block into (TL, w_out); lane-dense last dim, the TL
    leading slabs map onto sublanes."""
    bw, ew = int(pad_w[0]), int(pad_w[1])
    w_out = w_in + bw + ew

    def body(x_ref, o_ref):
        tl = o_ref.shape[0]
        if bw:
            o_ref[:, 0:bw] = jnp.full((tl, bw), fill_value, dtype)
        if ew:
            o_ref[:, bw + w_in:w_out] = jnp.full((tl, ew), fill_value, dtype)
        o_ref[:, bw:bw + w_in] = x_ref[...]

    return body


def _make_routed_kernel_3d(h_in, w_in, pad_h, pad_w, fill_value, dtype):
    """Leading-dim padding case: per-slab scalar-prefetch routing.
    route[l] = src_slab(l) * 2 + is_pure_fill(l)."""
    body = _make_pad_body_3d(h_in, w_in, pad_h, pad_w, fill_value, dtype)

    def kernel(route_ref, x_ref, o_ref):
        l = pl.program_id(0)
        is_fill = (route_ref[l] % 2) == 1

        @pl.when(is_fill)
        def _pure_fill():
            o_ref[...] = jnp.full(o_ref.shape, fill_value, dtype)

        @pl.when(jnp.logical_not(is_fill))
        def _copy_pad():
            body(x_ref, o_ref)

    return kernel


# ---------------------------------------------------------------------------
# Host-side helpers
# ---------------------------------------------------------------------------

def _vmem_capacity_bytes():
    try:
        return int(pltpu.get_tpu_info().vmem_capacity_bytes)
    except Exception:
        return 64 * 2 ** 20  # conservative: v7x per-TensorCore VMEM


def _pick_tl(num_slabs, out_slab_bytes, target_block_bytes, sublane_dim):
    """Number of leading slabs batched per grid step."""
    tl = max(1, target_block_bytes // max(1, out_slab_bytes))
    # Keep >= ~4 grid steps when possible (pipelining + both v7x TensorCores).
    tl = min(tl, max(1, -(-num_slabs // 4)))
    tl = int(min(tl, num_slabs))
    if sublane_dim:
        # TL is the block's second-to-last (sublane) dim: it must be a
        # multiple of 8 or equal to the full leading extent.
        tl = num_slabs if num_slabs <= 8 else max(8, (tl // 8) * 8)
    return max(1, int(tl))


# ---------------------------------------------------------------------------
# Public wrapper
# ---------------------------------------------------------------------------

def onnx_pad_dynamic(x, pads, constant_value=0.0, mode="constant"):
    """JAX/Pallas equivalent of OnnxPadDynamic.forward (constant mode).

    `pads` must be concrete (the output shape depends on it): pass a Python
    list / numpy array, or a non-traced device array.
    """
    if mode != "constant":
        # TODO(synk): 'reflect'/'replicate' need gather-style edge handling;
        # not implemented in the Pallas kernel.
        raise NotImplementedError(f"mode={mode!r} not supported")

    x = jnp.asarray(x)
    ndim = x.ndim
    try:
        pads_host = [int(p) for p in np.asarray(pads).reshape(-1)]
    except Exception as exc:  # e.g. traced `pads` under jit
        raise ValueError(
            "OnnxPadDynamic: `pads` must be concrete (the output shape "
            "depends on it); pass a Python list / numpy array.") from exc
    if len(pads_host) != 2 * ndim:
        raise ValueError("ONNX pads must have length 2 * rank")
    if any(p < 0 for p in pads_host):
        # TODO(synk): negative ONNX pads (cropping) are not implemented.
        raise NotImplementedError("negative (cropping) pads are not supported")
    # TODO(synk): a traced/dynamic constant_value would need an SMEM scalar
    # input; it is assumed to be a static Python scalar here.
    fill = constant_value

    begin, end = pads_host[:ndim], pads_host[ndim:]
    out_shape = tuple(int(d) + b + e for d, b, e in zip(x.shape, begin, end))

    if ndim == 0 or all(p == 0 for p in pads_host):
        return x
    if x.size == 0 or int(np.prod(out_shape)) == 0:
        return jnp.full(out_shape, fill, dtype=x.dtype)

    shape = [int(d) for d in x.shape]
    padded_dims = [i for i in range(ndim) if begin[i] + end[i] > 0]
    lp = padded_dims[-1]

    # ---- canonical (L[, H], W) view ----------------------------------------
    # W: last padded dim with all trailing (unpadded) dims folded in.
    t = int(np.prod(shape[lp + 1:])) if lp + 1 < ndim else 1
    w_in = shape[lp] * t
    pad_w = (begin[lp] * t, end[lp] * t)
    w_out = w_in + pad_w[0] + pad_w[1]

    if len(padded_dims) >= 2:
        sp = padded_dims[-2]
        m = int(np.prod(shape[sp + 1:lp])) if sp + 1 < lp else 1
        h_in = shape[sp] * m
        pad_h = (begin[sp] * m, end[sp] * m)
        h_out = h_in + pad_h[0] + pad_h[1]
        lead = shape[:sp]
        lead_begin, lead_end = begin[:sp], end[:sp]
    else:
        sp = None
        h_in = h_out = 1
        pad_h = (0, 0)
        lead = shape[:lp]
        lead_begin, lead_end = begin[:lp], end[:lp]

    lead_out = [d + b + e for d, b, e in zip(lead, lead_begin, lead_end)]
    l_in = int(np.prod(lead)) if lead else 1
    l_out = int(np.prod(lead_out)) if lead_out else 1
    lead_padded = any(b + e for b, e in zip(lead_begin, lead_end))

    itemsize = jnp.dtype(x.dtype).itemsize
    vmem_cap = _vmem_capacity_bytes()
    vmem_budget = (vmem_cap * 3) // 4  # headroom for compiler scratch / sems
    target_block = int(min(8 << 20, max(2 << 20, vmem_cap // 24)))
    total_bytes = (int(x.size) + int(np.prod(out_shape))) * itemsize
    cost = pl.CostEstimate(flops=0, transcendentals=0,
                           bytes_accessed=int(total_bytes))

    def _params(in_blk_bytes, out_blk_bytes):
        need = 3 * (in_blk_bytes + out_blk_bytes) + (4 << 20)
        return pltpu.CompilerParams(
            dimension_semantics=("parallel",),
            vmem_limit_bytes=int(min(vmem_budget, max(16 << 20, need))),
        )

    # TODO(synk): a single slab whose double-buffered working set exceeds the
    # VMEM budget (huge padded H*W with L == 1) would additionally need
    # pad-aware H/W tiling inside the slab; not implemented.

    if not lead_padded:
        # -------- common case: affine routing, batch TL slabs per grid step.
        if sp is not None:
            x_v = x.reshape(l_in, h_in, w_in)
            out_slab = h_out * w_out * itemsize
            tl = _pick_tl(l_out, out_slab, target_block, sublane_dim=False)
            grid = (pl.cdiv(l_out, tl),)
            in_blk = tl * h_in * w_in * itemsize
            out_blk = tl * h_out * w_out * itemsize
            body = _make_pad_body_3d(h_in, w_in, pad_h, pad_w, fill, x.dtype)
            out_v = pl.pallas_call(
                body,
                out_shape=jax.ShapeDtypeStruct((l_out, h_out, w_out), x.dtype),
                grid=grid,
                in_specs=[pl.BlockSpec((tl, h_in, w_in), lambda i: (i, 0, 0))],
                out_specs=pl.BlockSpec((tl, h_out, w_out), lambda i: (i, 0, 0)),
                compiler_params=_params(in_blk, out_blk),
                cost_estimate=cost,
            )(x_v)
        else:
            # Single padded dim group: lane-dense 2-D (L, W) view; TL leading
            # slabs map onto sublanes.
            x_v = x.reshape(l_in, w_in)
            out_slab = w_out * itemsize
            tl = _pick_tl(l_out, out_slab, target_block, sublane_dim=True)
            grid = (pl.cdiv(l_out, tl),)
            in_blk = tl * w_in * itemsize
            out_blk = tl * w_out * itemsize
            body = _make_pad_body_2d(w_in, pad_w, fill, x.dtype)
            out_v = pl.pallas_call(
                body,
                out_shape=jax.ShapeDtypeStruct((l_out, w_out), x.dtype),
                grid=grid,
                in_specs=[pl.BlockSpec((tl, w_in), lambda i: (i, 0))],
                out_specs=pl.BlockSpec((tl, w_out), lambda i: (i, 0)),
                compiler_params=_params(in_blk, out_blk),
                cost_estimate=cost,
            )(x_v)
        return out_v.reshape(out_shape)

    # -------- rare case: padded leading dims -> scalar-prefetch routing -----
    # route[l] = src_slab(l) * 2 + is_pure_fill(l).  Pure-fill slabs carry the
    # most recent valid slab's src index so the input block index does not
    # change across fill runs (Pallas then skips re-issuing the input DMA).
    coords = np.stack(np.unravel_index(np.arange(l_out), tuple(lead_out)), axis=0)
    in_coords = coords - np.asarray(lead_begin, dtype=np.int64)[:, None]
    lead_in_arr = np.asarray(lead, dtype=np.int64)[:, None]
    valid = np.all((in_coords >= 0) & (in_coords < lead_in_arr), axis=0)
    clipped = np.clip(in_coords, 0, lead_in_arr - 1)
    src = np.ravel_multi_index(tuple(clipped), tuple(lead))
    pos = np.maximum.accumulate(np.where(valid, np.arange(l_out), -1))
    first_valid = int(np.flatnonzero(valid)[0])
    pos = np.where(pos < 0, first_valid, pos)
    src = np.asarray(src)[pos]
    route = jnp.asarray((src * 2 + (~valid).astype(np.int64)).astype(np.int32))

    x_v = x.reshape(l_in, h_in, w_in)
    in_blk = h_in * w_in * itemsize
    out_blk = h_out * w_out * itemsize
    kernel = _make_routed_kernel_3d(h_in, w_in, pad_h, pad_w, fill, x.dtype)

    grid_spec = pltpu.PrefetchScalarGridSpec(
        num_scalar_prefetch=1,
        grid=(l_out,),
        in_specs=[pl.BlockSpec((1, h_in, w_in),
                               lambda l, route_ref: (route_ref[l] // 2, 0, 0))],
        out_specs=pl.BlockSpec((1, h_out, w_out),
                               lambda l, route_ref: (l, 0, 0)),
    )
    out_v = pl.pallas_call(
        kernel,
        out_shape=jax.ShapeDtypeStruct((l_out, h_out, w_out), x.dtype),
        grid_spec=grid_spec,
        compiler_params=_params(in_blk, out_blk),
        cost_estimate=cost,
    )(route, x_v)
    return out_v.reshape(out_shape)


# ---------------------------------------------------------------------------
# Self-test
# ---------------------------------------------------------------------------

if __name__ == "__main__":
    key = jax.random.PRNGKey(0)
    x = jax.random.normal(key, (2, 4, 16, 16), dtype=jnp.float32)

    # Test 1: spatial (H, W) padding only -- common ONNX case (affine 3-D path,
    # multiple slabs batched per grid step).
    pads1 = jnp.array([0, 0, 1, 2, 0, 0, 3, 1], dtype=jnp.int32)
    out1 = jax.block_until_ready(onnx_pad_dynamic(x, pads1, constant_value=1.5))
    ref1 = jnp.pad(x, [(0, 0), (0, 0), (1, 3), (2, 1)],
                   mode="constant", constant_values=1.5)
    assert out1.shape == (2, 4, 20, 19), out1.shape
    assert out1.dtype == x.dtype
    np.testing.assert_array_equal(np.asarray(out1), np.asarray(ref1))

    # Test 2: padding that also hits a leading (channel) dim (scalar-prefetch
    # routed path with carried src for pure-fill slabs).
    pads2 = [0, 1, 2, 0, 0, 1, 0, 3]
    out2 = jax.block_until_ready(onnx_pad_dynamic(x, pads2, constant_value=-2.0))
    ref2 = jnp.pad(x, [(0, 0), (1, 1), (2, 0), (0, 3)],
                   mode="constant", constant_values=-2.0)
    assert out2.shape == (2, 6, 18, 19), out2.shape
    np.testing.assert_array_equal(np.asarray(out2), np.asarray(ref2))

    # Test 3: only the channel dim padded -> trailing dims folded into a
    # lane-dense W axis (affine 2-D path).
    pads3 = [0, 1, 0, 0, 0, 2, 0, 0]
    out3 = jax.block_until_ready(onnx_pad_dynamic(x, pads3, constant_value=0.25))
    ref3 = jnp.pad(x, [(0, 0), (1, 2), (0, 0), (0, 0)],
                   mode="constant", constant_values=0.25)
    assert out3.shape == (2, 7, 16, 16), out3.shape
    np.testing.assert_array_equal(np.asarray(out3), np.asarray(ref3))

    # Test 4: only the last dim padded (affine 2-D path, sublane-aligned TL).
    pads4 = [0, 0, 0, 2, 0, 0, 0, 1]
    out4 = jax.block_until_ready(onnx_pad_dynamic(x, pads4, constant_value=3.0))
    ref4 = jnp.pad(x, [(0, 0), (0, 0), (0, 0), (2, 1)],
                   mode="constant", constant_values=3.0)
    assert out4.shape == (2, 4, 16, 19), out4.shape
    np.testing.assert_array_equal(np.asarray(out4), np.asarray(ref4))

    print("KERNEL_OK")
</pallas_src>

<mosaic_0001>
module attributes {stable_mosaic.version = 11 : i64} {
  func.func @body(%arg0: i32, %arg1: memref<2x16x16xf32, #tpu.memory_space<vmem>>, %arg2: memref<2x20x19xf32, #tpu.memory_space<vmem>>) attributes {dimension_semantics = [#tpu.dimension_semantics<parallel>], iteration_bounds = array<i64: 4>, scalar_prefetch = 0 : i64, scratch_operands = 0 : i64, tpu.core_type = #tpu.core_type<tc>, window_params = [{transform_indices = @transform_0, window_bounds = array<i64: 2, 16, 16>}, {transform_indices = @transform_1, window_bounds = array<i64: 2, 20, 19>}]} {
    %cst = arith.constant 1.500000e+00 : f32
    %0 = vector.broadcast %cst : f32 to vector<2x1x19xf32>
    %c0 = arith.constant 0 : index
    %c0_0 = arith.constant 0 : index
    %c0_1 = arith.constant 0 : index
    %1 = vector.load %arg2[%c0, %c0_0, %c0_1] : memref<2x20x19xf32, #tpu.memory_space<vmem>>, vector<2x1x19xf32>
    tpu.vector_store %arg2[%c0, %c0_0, %c0_1], %0 {strides = array<i32>} : memref<2x20x19xf32, #tpu.memory_space<vmem>>, vector<2x1x19xf32>,
    %cst_2 = arith.constant 1.500000e+00 : f32
    %2 = vector.broadcast %cst_2 : f32 to vector<2x3x19xf32>
    %c0_3 = arith.constant 0 : index
    %c17 = arith.constant 17 : index
    %c0_4 = arith.constant 0 : index
    %3 = vector.load %arg2[%c0_3, %c17, %c0_4] : memref<2x20x19xf32, #tpu.memory_space<vmem>>, vector<2x3x19xf32>
    tpu.vector_store %arg2[%c0_3, %c17, %c0_4], %2 {strides = array<i32>} : memref<2x20x19xf32, #tpu.memory_space<vmem>>, vector<2x3x19xf32>,
    %cst_5 = arith.constant 1.500000e+00 : f32
    %4 = vector.broadcast %cst_5 : f32 to vector<2x16x2xf32>
    %c0_6 = arith.constant 0 : index
    %c1 = arith.constant 1 : index
    %c0_7 = arith.constant 0 : index
    %5 = vector.load %arg2[%c0_6, %c1, %c0_7] : memref<2x20x19xf32, #tpu.memory_space<vmem>>, vector<2x16x2xf32>
    tpu.vector_store %arg2[%c0_6, %c1, %c0_7], %4 {strides = array<i32>} : memref<2x20x19xf32, #tpu.memory_space<vmem>>, vector<2x16x2xf32>,
    %cst_8 = arith.constant 1.500000e+00 : f32
    %6 = vector.broadcast %cst_8 : f32 to vector<2x16x1xf32>
    %c0_9 = arith.constant 0 : index
    %c1_10 = arith.constant 1 : index
    %c18 = arith.constant 18 : index
    %7 = vector.load %arg2[%c0_9, %c1_10, %c18] : memref<2x20x19xf32, #tpu.memory_space<vmem>>, vector<2x16x1xf32>
    tpu.vector_store %arg2[%c0_9, %c1_10, %c18], %6 {strides = array<i32>} : memref<2x20x19xf32, #tpu.memory_space<vmem>>, vector<2x16x1xf32>,
    %c0_11 = arith.constant 0 : index
    %c0_12 = arith.constant 0 : index
    %c0_13 = arith.constant 0 : index
    %8 = vector.load %arg1[%c0_11, %c0_12, %c0_13] : memref<2x16x16xf32, #tpu.memory_space<vmem>>, vector<2x16x16xf32>
    %c0_14 = arith.constant 0 : index
    %c1_15 = arith.constant 1 : index
    %c2 = arith.constant 2 : index
    %9 = vector.load %arg2[%c0_14, %c1_15, %c2] : memref<2x20x19xf32, #tpu.memory_space<vmem>>, vector<2x16x16xf32>
    tpu.vector_store %arg2[%c0_14, %c1_15, %c2], %8 {strides = array<i32>} : memref<2x20x19xf32, #tpu.memory_space<vmem>>, vector<2x16x16xf32>,
    return
  }
  func.func @transform_0(%arg0: i32) -> (i32, i32, i32) {
    %c0_i32 = arith.constant 0 : i32
    %c0_i32_0 = arith.constant 0 : i32
    %c0_i32_1 = arith.constant 0 : i32
    return %arg0, %c0_i32, %c0_i32_0 : i32, i32, i32
  }
  func.func @transform_1(%arg0: i32) -> (i32, i32, i32) {
    %c0_i32 = arith.constant 0 : i32
    %c0_i32_0 = arith.constant 0 : i32
    %c0_i32_1 = arith.constant 0 : i32
    return %arg0, %c0_i32, %c0_i32_0 : i32, i32, i32
  }
}

</mosaic_0001>

<bundles_post_ra>
// kernel: tpu_custom_call.1
= control target key start
LH: loop header
LB: loop body
LE: loop exit
PB: predicated region body
PF: predicated region fallthrough
CT: control target
= control target key end

     0   :  { %6 = vsyncpa [#allocation3], 0  ;;  %s503_s0 = inlined_call_operand.hbm [shape: f32[8,16,16], index: 0, kind: input, shape index: {}]   ;;  %s504_s1 = inlined_call_operand.vmem [shape: f32[8,20,19], index: 1, kind: output, shape index: {}]  }
   0x1   :  { %8 = vsyncpa [#allocation3 + $0x1], 0  ;;  %s394_s6 = smov 0   ;;  %s396_s7 = smov 0  }
   0x2   :  { %s398_s8 = smov 0   ;;  %s400_s9 = smov 0  }
   0x3 LB: > { %s254_s10 = sadd.s32 4294967295, %s378_s9   ;;  %s414_s11 = sadd.s32 1, %s378_s9   ;;  %s378_s9 = sphi %s400_s9, %s511_s9   ;;  %s374_s8 = sphi %s398_s8, %s510_s8   ;;  %s370_s7 = sphi %s396_s7, %s509_s7   ;;  %s366_s6 = sphi %s394_s6, %s508_s6  }
   0x4   : > { %s18_s12 = ssub.s32 %s378_s9, %s414_s11  ;;  %s21_s13 = sadd.s32 1, %s374_s8 }
   0x5   : > { %p19_p0 = scmp.eq.s32.totalorder %s18_s12, 0  ;;  %p28_p1 = scmp.ne.s32.totalorder %s374_s8, %s370_s7 }
   0x6   : > { %p29_p2 = scmp.eq.s32.totalorder %s378_s9, 0  ;;  %p34_p3 = scmp.ne.s32.totalorder %s370_s7, %s366_s6 }
   0x7   : > { %s424_s14 = scalar_select %p19_p0, %s374_s8, %s21_s13  }
   0x8   : > { %p426_p4 = por %p29_p2, %p28_p1  ;;  %p35_p5 = scmp.eq.s32.totalorder %s254_s10, 0 }
   0x9   : > { %p277_p6 = scmp.lt.s32.totalorder %s378_s9, 4  ;;  %s84_s17 = sand.u32 1, %s374_s8  }
   0xa   : > { %p433_p7 = por %p35_p5, %p34_p3  ;;  %s258_s18 = sshll.u32 %s84_s17, 5 }
   0xb   : > { %s269_s19 = sshll.u32 %s378_s9, 5  ;;  %s88_s23 = scalar_lea.vmem [#allocation2], %s258_s18 }
   0xc   : > { %s94_s22 = scalar_lea.hbm %s503_s0, %s269_s19  ;;  %s97_s24 = sshll.u32 %s88_s23, 4  ;;  %s98_s24 = int_to_ptr.vmem [resolvable:$true] %s97_s24 }
   0xd   : > { %s95_s25 = sshll.u32 %s94_s22, 4  ;;  %p444_p8 = pnand %p277_p6, %p426_p4  ;;  %s96_s25 = int_to_ptr.hbm [resolvable:$true] %s95_s25 }
   0xe   : > { %p262_p9 = scmp.ge.s32.totalorder %s378_s9, 1  ;;  %s85_s27 = scalar_lea.sflag [#allocation3], %s84_s17 }
   0xf   : > { %s314_s28 = sshra.s32 %s96_s25, 4  ;;  %p318_p11 = pneg %p444_p8  ;;  %s315_s28 = int_to_ptr.hbm [resolvable:$true] %s314_s28 }
  0x10   : > { %s316_s29 = scalar_lea.hbm %s315_s28, 32  ;;  %s321_s3 = scalar_lea.hbm %s503_s0, 128 }
  0x11   : > { %p317_p10 = scmp.ne.s32.totalorder %s315_s28, %s316_s29  ;;  %p322_p0 = scmp.lt.s32.totalorder %s315_s28, %s503_s0 }
  0x12   : > { %p323_p1 = scmp.lt.s32.totalorder %s321_s3, %s316_s29 }
  0x13   : > { %p319_p12 = pnand %p318_p11, %p317_p10 }
  0x14   : > { %p324_p2 = por %p323_p1, %p322_p0 }
  0x15   : > { %p320_p13 = pneg %p319_p12 }
  0x17   : > { %p325_p3 = pnand %p324_p2, %p320_p13 }
  0x19   : > { %328 = shalt.err (!%p325_p3)
}
  0x1a   : > { %s380_s6 = smov 128   ;;  %s381_s12 = smov 8  }
  0x1b   : > { %276 = dma.hbm_to_vmem [thread:$0]  (!%p444_p8), %s96_s25, 512, %s98_s24, %s85_s27, %s380_s6, %s380_s6, %s381_s12  }
  0x1c   : > { %p105_p4 = scmp.lt.s32.totalorder %s378_s9, 5 }
  0x1e   : > { %p106_p5 = pnand %p262_p9, %p105_p4 }
  0x1f   : > { %s111_s13 = sand.u32 (!%p106_p5), 1, %s370_s7  }
  0x20   : > { %109 = sbr.rel (%p106_p5) target bundleno = 165 (0xa5), region = 24  ;;  %s263_s15 = sshll.u32 (!%p106_p5), %s111_s13, 5 }
  0x21   : > { %s112_s17 = scalar_lea.sflag (!%p106_p5), [#allocation3], %s111_s13  ;;  %s115_s18 = scalar_lea.vmem (!%p106_p5), [#allocation2], %s263_s15 }
  0x25   : > { %361 = dma.done.wait (%p433_p7), %s112_s17, 512  }
  0x26   : > { %363 = vsyncadd (%p433_p7), %s112_s17, 4294966784  ;;  %s264_s19 = sshll.u32 %s254_s10, 1  ;;  %vm144_vm0 = vcmask 147456   ;;  %v160_v0 = vld [vmem:[%s115_s18] sm:$0xff]  ;;  %v162_v1 = vld [vmem:[%s115_s18 + $0x10] sm:$0xff]  ;;  %vm147_vm1 = vcmask 149504  }
  0x27   : > { %p138_p6 = scmp.lt.s32.totalorder %s264_s19, 7  ;;  %s382_s9 = smov 2   ;;  %v383_v2 = vmov 1.5   ;;  %vm150_vm2 = vcmask 15360   ;;  %vm155_vm3 = vcmask 154768   ;;  %v161_v3 = vld [vmem:[%s115_s18 + $0x8] sm:$0xff] }
  0x28   : > { %168 = vrot.lane.b32.xlu0 %v160_v0, %s382_s9  ;;  %172 = vrot.lane.b32.xlu1 %v162_v1, %s382_s9  ;;  %v163_v4 = vld [vmem:[%s115_s18 + $0x18] sm:$0xff]  ;;  %vm180_vm4 = vcmask 146448  }
  0x29   : > { %s513_s19 = smov (!%p138_p6, %s264_s19), 7 }
  0x2a   : > { %s270_s20 = smul.u32 24, %s513_s19 }
  0x2c   : > { %s472_s23 = scalar_lea.vmem %s504_s1, %s270_s20 }
  0x2d   : > { %145 = vst.msk [vmem:[%s472_s23] sm:$0x1] %vm144_vm0, %v383_v2 }
  0x2e   : > { %146 = vst.msk [vmem:[%s472_s23 + $0x18] sm:$0x1] %vm144_vm0, %v383_v2 }
  0x2f   : > { %148 = vst.msk [vmem:[%s472_s23 + $0x11] sm:$0x7] %vm147_vm1, %v383_v2 }
  0x30   : > { %149 = vst.msk [vmem:[%s472_s23 + $0x29] sm:$0x7] %vm147_vm1, %v383_v2  ;;  %170 = vrot.lane.b32.xlu0 %v161_v3, %s382_s9  ;;  %174 = vrot.lane.b32.xlu1 %v163_v4, %s382_s9 }
  0x31   : > { %151 = vst.msk [vmem:[%s472_s23 + $0x1] sm:$0xff] %vm150_vm2, %v383_v2 }
  0x32   : > { %153 = vst.msk [vmem:[%s472_s23 + $0x19] sm:$0xff] %vm150_vm2, %v383_v2 }
  0x33   : > { %156 = vst.msk [vmem:[%s472_s23 + $0x1] sm:$0xff] %vm155_vm3, %v383_v2 }
  0x34   : > { %158 = vst.msk [vmem:[%s472_s23 + $0x19] sm:$0xff] %vm155_vm3, %v383_v2 }
  0x35   : > { %152 = vst.msk [vmem:[%s472_s23 + $0x9] sm:$0xff] %vm150_vm2, %v383_v2 }
  0x36   : > { %154 = vst.msk [vmem:[%s472_s23 + $0x21] sm:$0xff] %vm150_vm2, %v383_v2 }
  0x37   : > { %157 = vst.msk [vmem:[%s472_s23 + $0x9] sm:$0xff] %vm155_vm3, %v383_v2 }
  0x38   : > { %159 = vst.msk [vmem:[%s472_s23 + $0x21] sm:$0xff] %vm155_vm3, %v383_v2 }
  0x9a   : > { %v169_v5 = vpop.permute.xlu0 %168  ;;  %v173_v6 = vpop.permute.xlu1 %172 }
  0x9b   : > { %181 = vst.msk [vmem:[%s472_s23 + $0x1] sm:$0xff] %vm180_vm4, %v169_v5 }
  0x9c   : > { %183 = vst.msk [vmem:[%s472_s23 + $0x19] sm:$0xff] %vm180_vm4, %v173_v6 }
  0xa2   : > { %v171_v7 = vpop.permute.xlu0 %170  ;;  %v175_v8 = vpop.permute.xlu1 %174 }
  0xa3   : > { %182 = vst.msk [vmem:[%s472_s23 + $0x9] sm:$0xff] %vm180_vm4, %v171_v7 }
  0xa4   : > { %184 = vst.msk [vmem:[%s472_s23 + $0x21] sm:$0xff] %vm180_vm4, %v175_v8 }
  0xa5 PF: > { %p11_p7 = scmp.ge.s32.totalorder %s414_s11, 6   ;;  %s508_s6 = smov %s370_s7 }
  0xa6   : > { %s509_s7 = smov %s374_s8  ;;  %s510_s8 = smov %s424_s14 }
  0xa7   : > { %s511_s9 = smov %s414_s11  ;;  %13 = sbr.rel (!%p11_p7) target bundleno = 3 (0x3), region = 64 }
  0xac   :  { %209 = vsyncpa [#allocation3], 1 }
  0xad   :  { %211 = vsyncpa [#allocation3 + $0x1], 1 }

</bundles_post_ra>
